<compile_context>
chip_gen: v7x
topology: tpu7x:2x2x1
jax: 0.10.0
libtpu: 0.0.40
codegen_flags: <defaults>
</compile_context>

<pallas_src>
import jax
import jax.numpy as jnp
from jax.experimental import pallas as pl
from jax.experimental.pallas import tpu as pltpu

# Small, self-consistent hyper-parameters (num_channels must divide num_heads).
E = 32          # num_channels (embed dim)
H = 4           # num_heads
DH = E // H     # head dim
DFF = 64        # dim_feedforward
EPS = 1e-5      # nn.LayerNorm default eps
NEG_INF = -1e30


def _layernorm(x, gamma, beta):
    mean = jnp.mean(x, axis=-1, keepdims=True)
    var = jnp.mean((x - mean) ** 2, axis=-1, keepdims=True)
    return (x - mean) * jax.lax.rsqrt(var + EPS) * gamma + beta


def encoder_kernel(x_ref, bidc_ref, bidr_ref,
                   wqkv_ref, bqkv_ref, wo_ref, bo_ref,
                   w1_ref, b1_ref, w2_ref, b2_ref,
                   g1_ref, be1_ref, g2_ref, be2_ref,
                   o_ref):
    x = x_ref[...]                       # (N, E) with N = S*B (all batches fused)
    n = x.shape[0]

    # --- fused QKV projection: one (N,E) x (E,3E) MXU push + one bias add ---
    qkv = jnp.dot(x, wqkv_ref[...], preferred_element_type=jnp.float32) + bqkv_ref[...]

    # Block-diagonal additive bias built in-kernel: 0 for same-batch pairs,
    # -1e30 for cross-batch pairs.  Hoisted out of the head loop (computed once).
    bias = jnp.where(bidc_ref[...] == bidr_ref[...], 0.0, NEG_INF)    # (N, N)

    # Fold the 1/sqrt(DH) softmax scale into Q once (N*E muls, not H*N*N).
    scale = 1.0 / (DH ** 0.5)
    q_all = qkv[:, :E] * scale                                        # (N, E)

    ctx = jnp.zeros((n, E), jnp.float32)
    for h in range(H):                   # static unroll over heads (H = 4)
        qh = q_all[:, h * DH:(h + 1) * DH]                            # (N, DH)
        kh = qkv[:, E + h * DH:E + (h + 1) * DH]                      # (N, DH)
        vh = qkv[:, 2 * E + h * DH:2 * E + (h + 1) * DH]              # (N, DH)

        s = jnp.dot(qh, kh.T, preferred_element_type=jnp.float32) + bias
        s = s - jnp.max(s, axis=-1, keepdims=True)
        e = jnp.exp(s)
        # EUP reciprocal instead of a VPU divide sequence.
        p = e * pl.reciprocal(jnp.sum(e, axis=-1, keepdims=True), approx=True)

        # Fold the out-projection into the head loop (no lane concatenate):
        #   attn @ Wo == sum_h (softmax_h @ V_h) @ Wo[h*DH:(h+1)*DH, :]
        pv = jnp.dot(p, vh, preferred_element_type=jnp.float32)        # (N, DH)
        ctx = ctx + jnp.dot(pv, wo_ref[h * DH:(h + 1) * DH, :],
                            preferred_element_type=jnp.float32)        # (N, E)

    attn = ctx + bo_ref[...]

    # --- residual + norm1 (dropout1 == identity at inference) ---
    h1 = _layernorm(x + attn, g1_ref[...], be1_ref[...])

    # --- feed-forward: linear2(relu(linear1(x))) ---
    ff = jnp.dot(h1, w1_ref[...], preferred_element_type=jnp.float32) + b1_ref[...]
    ff = jnp.maximum(ff, 0.0)
    ff = jnp.dot(ff, w2_ref[...], preferred_element_type=jnp.float32) + b2_ref[...]

    # --- residual + norm2 (dropout2 == identity at inference) ---
    o_ref[...] = _layernorm(h1 + ff, g2_ref[...], be2_ref[...])


def transformer_encoder(x_sbe, params):
    """x_sbe: (S, B, E) float32 -> (S, B, E) float32 (PyTorch MHA layout)."""
    S, Bb, e = x_sbe.shape
    assert e == E
    N = S * Bb

    # Free contiguous view: row n of x2d is (s = n // B, b = n % B). No transposes.
    x2d = x_sbe.reshape(N, E)

    # Per-row batch id, passed as a column and a row vector (O(N) HBM instead of
    # an O(N^2) mask); the kernel broadcasts/compares them into the block-diagonal
    # attention bias.  Integer-valued f32 so the in-kernel compare is exact.
    bid = (jnp.arange(N, dtype=jnp.int32) % Bb).astype(jnp.float32)
    bid_col = bid.reshape(N, 1)
    bid_row = bid.reshape(1, N)
    # TODO(synk): fold user attn_mask / key_padding_mask into an extra additive
    #             bias input here if the module is called with masks.

    order = ("wqkv", "bqkv", "wo", "bo", "w1", "b1", "w2", "b2",
             "g1", "be1", "g2", "be2")
    weights = [params[name] for name in order]

    vmem_spec = pl.BlockSpec(memory_space=pltpu.MemorySpace.VMEM)
    out2d = pl.pallas_call(
        encoder_kernel,
        out_shape=jax.ShapeDtypeStruct((N, E), jnp.float32),
        # Single kernel invocation (no grid): every operand is a whole-array
        # VMEM block.  Total footprint is well under any VMEM limit.
        in_specs=[vmem_spec] * (3 + len(weights)),
        out_specs=vmem_spec,
    )(x2d, bid_col, bid_row, *weights)

    return out2d.reshape(S, Bb, E)       # free contiguous view back to (S, B, E)


def reference(x_sbe, params):
    """Pure-JAX reference of the same math for a correctness check."""
    xb_all = jnp.transpose(x_sbe, (1, 0, 2))  # (B, S, E)
    wqkv, bqkv = params["wqkv"], params["bqkv"]

    def one(xb):
        q = xb @ wqkv[:, :E] + bqkv[:, :E]
        k = xb @ wqkv[:, E:2 * E] + bqkv[:, E:2 * E]
        v = xb @ wqkv[:, 2 * E:] + bqkv[:, 2 * E:]
        scale = 1.0 / (DH ** 0.5)
        outs = []
        for h in range(H):
            sl = slice(h * DH, (h + 1) * DH)
            s = (q[:, sl] @ k[:, sl].T) * scale
            p = jax.nn.softmax(s, axis=-1)
            outs.append(p @ v[:, sl])
        attn = jnp.concatenate(outs, axis=-1) @ params["wo"] + params["bo"]
        h1 = _layernorm(xb + attn, params["g1"], params["be1"])
        ff = jnp.maximum(h1 @ params["w1"] + params["b1"], 0.0) @ params["w2"] + params["b2"]
        return _layernorm(h1 + ff, params["g2"], params["be2"])

    return jnp.transpose(jax.vmap(one)(xb_all), (1, 0, 2))


def make_params(key):
    ks = jax.random.split(key, 8)
    n = lambda k, shape, s=0.05: (s * jax.random.normal(k, shape)).astype(jnp.float32)
    return {
        # fused in-proj, stored pre-transposed so the kernel computes x @ Wqkv
        "wqkv": n(ks[0], (E, 3 * E)), "bqkv": n(ks[1], (1, 3 * E)),
        # out-proj
        "wo": n(ks[2], (E, E)), "bo": n(ks[3], (1, E)),
        # feed-forward (pre-transposed vs. PyTorch Linear storage)
        "w1": n(ks[4], (E, DFF)), "b1": n(ks[5], (1, DFF)),
        "w2": n(ks[6], (DFF, E)), "b2": n(ks[7], (1, E)),
        # layernorms
        "g1": jnp.ones((1, E), jnp.float32), "be1": jnp.zeros((1, E), jnp.float32),
        "g2": jnp.ones((1, E), jnp.float32), "be2": jnp.zeros((1, E), jnp.float32),
    }


if __name__ == "__main__":
    key = jax.random.PRNGKey(0)
    k_x, k_p = jax.random.split(key)
    S, B = 8, 2
    x = jax.random.normal(k_x, (S, B, E), dtype=jnp.float32)
    params = make_params(k_p)

    fwd = jax.jit(transformer_encoder)
    out = jax.block_until_ready(fwd(x, params))
    ref = reference(x, params)
    assert out.shape == (S, B, E)
    # Tolerance accounts for the EUP approximate-reciprocal softmax; real bugs
    # (wrong mask/scale/slicing) produce errors orders of magnitude larger.
    err = float(jnp.max(jnp.abs(out - ref)))
    assert err < 5e-3, f"kernel/reference mismatch: max abs err {err}"
    print("KERNEL_OK")
</pallas_src>

<mosaic_0001>
module attributes {stable_mosaic.version = 11 : i64} {
  func.func @encoder_kernel(%arg0: memref<16x32xf32, #tpu.memory_space<vmem>>, %arg1: memref<16x1xf32, #tpu.memory_space<vmem>>, %arg2: memref<1x16xf32, #tpu.memory_space<vmem>>, %arg3: memref<32x96xf32, #tpu.memory_space<vmem>>, %arg4: memref<1x96xf32, #tpu.memory_space<vmem>>, %arg5: memref<32x32xf32, #tpu.memory_space<vmem>>, %arg6: memref<1x32xf32, #tpu.memory_space<vmem>>, %arg7: memref<32x64xf32, #tpu.memory_space<vmem>>, %arg8: memref<1x64xf32, #tpu.memory_space<vmem>>, %arg9: memref<64x32xf32, #tpu.memory_space<vmem>>, %arg10: memref<1x32xf32, #tpu.memory_space<vmem>>, %arg11: memref<1x32xf32, #tpu.memory_space<vmem>>, %arg12: memref<1x32xf32, #tpu.memory_space<vmem>>, %arg13: memref<1x32xf32, #tpu.memory_space<vmem>>, %arg14: memref<1x32xf32, #tpu.memory_space<vmem>>, %arg15: memref<16x32xf32, #tpu.memory_space<vmem>>) attributes {dimension_semantics = [], scalar_prefetch = 0 : i64, scratch_operands = 0 : i64, tpu.core_type = #tpu.core_type<tc>} {
    %c0 = arith.constant 0 : index
    %c0_0 = arith.constant 0 : index
    %0 = vector.load %arg0[%c0, %c0_0] : memref<16x32xf32, #tpu.memory_space<vmem>>, vector<16x32xf32>
    %c0_1 = arith.constant 0 : index
    %c0_2 = arith.constant 0 : index
    %1 = vector.load %arg3[%c0_1, %c0_2] : memref<32x96xf32, #tpu.memory_space<vmem>>, vector<32x96xf32>
    %cst = arith.constant dense<0.000000e+00> : vector<16x96xf32>
    %2 = tpu.matmul %0, %1, %cst {dimension_numbers = #tpu.dot_dimension_numbers<[1], [0], [0], [1], [0, 0, 1, 1], [], []>} : vector<16x32xf32>, vector<32x96xf32>, vector<16x96xf32> -> vector<16x96xf32>
    %c0_3 = arith.constant 0 : index
    %c0_4 = arith.constant 0 : index
    %3 = vector.load %arg4[%c0_3, %c0_4] : memref<1x96xf32, #tpu.memory_space<vmem>>, vector<1x96xf32>
    %4 = vector.broadcast %3 : vector<1x96xf32> to vector<16x96xf32>
    %5 = arith.addf %2, %4 : vector<16x96xf32>
    %c0_5 = arith.constant 0 : index
    %c0_6 = arith.constant 0 : index
    %6 = vector.load %arg1[%c0_5, %c0_6] : memref<16x1xf32, #tpu.memory_space<vmem>>, vector<16x1xf32>
    %c0_7 = arith.constant 0 : index
    %c0_8 = arith.constant 0 : index
    %7 = vector.load %arg2[%c0_7, %c0_8] : memref<1x16xf32, #tpu.memory_space<vmem>>, vector<1x16xf32>
    %8 = vector.broadcast %6 : vector<16x1xf32> to vector<16x16xf32>
    %9 = vector.broadcast %7 : vector<1x16xf32> to vector<16x16xf32>
    %10 = arith.cmpf oeq, %8, %9 : vector<16x16xf32>
    %cst_9 = arith.constant 0.000000e+00 : f32
    %cst_10 = arith.constant -1.000000e+30 : f32
    %11 = vector.broadcast %cst_9 : f32 to vector<16x16xf32>
    %12 = vector.broadcast %cst_10 : f32 to vector<16x16xf32>
    %13 = arith.select %10, %11, %12 : vector<16x16xi1>, vector<16x16xf32>
    %14 = vector.extract_strided_slice %5 {offsets = [0, 0], sizes = [16, 32], strides = [1, 1]} : vector<16x96xf32> to vector<16x32xf32>
    %cst_11 = arith.constant 0.353553385 : f32
    %15 = vector.broadcast %cst_11 : f32 to vector<16x32xf32>
    %16 = arith.mulf %14, %15 : vector<16x32xf32>
    %cst_12 = arith.constant 0.000000e+00 : f32
    %17 = vector.broadcast %cst_12 : f32 to vector<16x32xf32>
    %18 = vector.extract_strided_slice %16 {offsets = [0, 0], sizes = [16, 8], strides = [1, 1]} : vector<16x32xf32> to vector<16x8xf32>
    %19 = vector.extract_strided_slice %5 {offsets = [0, 32], sizes = [16, 8], strides = [1, 1]} : vector<16x96xf32> to vector<16x8xf32>
    %20 = vector.extract_strided_slice %5 {offsets = [0, 64], sizes = [16, 8], strides = [1, 1]} : vector<16x96xf32> to vector<16x8xf32>
    %21 = tpu.transpose %19, [1, 0] : vector<16x8xf32> -> vector<8x16xf32>
    %cst_13 = arith.constant dense<0.000000e+00> : vector<16x16xf32>
    %22 = tpu.matmul %18, %21, %cst_13 {dimension_numbers = #tpu.dot_dimension_numbers<[1], [0], [0], [1], [0, 0, 1, 1], [], []>} : vector<16x8xf32>, vector<8x16xf32>, vector<16x16xf32> -> vector<16x16xf32>
    %23 = arith.addf %22, %13 : vector<16x16xf32>
    %cst_14 = arith.constant dense<0xFF800000> : vector<16xf32>
    %24 = vector.multi_reduction <maximumf>, %23, %cst_14 [1] : vector<16x16xf32> to vector<16xf32>
    %25 = vector.shape_cast %24 : vector<16xf32> to vector<16x1xf32>
    %26 = vector.broadcast %25 : vector<16x1xf32> to vector<16x16xf32>
    %27 = arith.subf %23, %26 : vector<16x16xf32>
    %28 = math.exp %27 : vector<16x16xf32>
    %cst_15 = arith.constant dense<0.000000e+00> : vector<16xf32>
    %29 = vector.multi_reduction <add>, %28, %cst_15 [1] : vector<16x16xf32> to vector<16xf32>
    %30 = vector.shape_cast %29 : vector<16xf32> to vector<16x1xf32>
    %31 = tpu.reciprocal %30 {approx = true} : vector<16x1xf32> -> vector<16x1xf32>
    %32 = vector.broadcast %31 : vector<16x1xf32> to vector<16x16xf32>
    %33 = arith.mulf %28, %32 : vector<16x16xf32>
    %cst_16 = arith.constant dense<0.000000e+00> : vector<16x8xf32>
    %34 = tpu.matmul %33, %20, %cst_16 {dimension_numbers = #tpu.dot_dimension_numbers<[1], [0], [0], [1], [0, 0, 1, 1], [], []>} : vector<16x16xf32>, vector<16x8xf32>, vector<16x8xf32> -> vector<16x8xf32>
    %c0_17 = arith.constant 0 : index
    %c0_18 = arith.constant 0 : index
    %35 = vector.load %arg5[%c0_17, %c0_18] : memref<32x32xf32, #tpu.memory_space<vmem>>, vector<8x32xf32>
    %cst_19 = arith.constant dense<0.000000e+00> : vector<16x32xf32>
    %36 = tpu.matmul %34, %35, %cst_19 {dimension_numbers = #tpu.dot_dimension_numbers<[1], [0], [0], [1], [0, 0, 1, 1], [], []>} : vector<16x8xf32>, vector<8x32xf32>, vector<16x32xf32> -> vector<16x32xf32>
    %37 = arith.addf %17, %36 : vector<16x32xf32>
    %38 = vector.extract_strided_slice %16 {offsets = [0, 8], sizes = [16, 8], strides = [1, 1]} : vector<16x32xf32> to vector<16x8xf32>
    %39 = vector.extract_strided_slice %5 {offsets = [0, 40], sizes = [16, 8], strides = [1, 1]} : vector<16x96xf32> to vector<16x8xf32>
    %40 = vector.extract_strided_slice %5 {offsets = [0, 72], sizes = [16, 8], strides = [1, 1]} : vector<16x96xf32> to vector<16x8xf32>
    %41 = tpu.transpose %39, [1, 0] : vector<16x8xf32> -> vector<8x16xf32>
    %cst_20 = arith.constant dense<0.000000e+00> : vector<16x16xf32>
    %42 = tpu.matmul %38, %41, %cst_20 {dimension_numbers = #tpu.dot_dimension_numbers<[1], [0], [0], [1], [0, 0, 1, 1], [], []>} : vector<16x8xf32>, vector<8x16xf32>, vector<16x16xf32> -> vector<16x16xf32>
    %43 = arith.addf %42, %13 : vector<16x16xf32>
    %cst_21 = arith.constant dense<0xFF800000> : vector<16xf32>
    %44 = vector.multi_reduction <maximumf>, %43, %cst_21 [1] : vector<16x16xf32> to vector<16xf32>
    %45 = vector.shape_cast %44 : vector<16xf32> to vector<16x1xf32>
    %46 = vector.broadcast %45 : vector<16x1xf32> to vector<16x16xf32>
    %47 = arith.subf %43, %46 : vector<16x16xf32>
    %48 = math.exp %47 : vector<16x16xf32>
    %cst_22 = arith.constant dense<0.000000e+00> : vector<16xf32>
    %49 = vector.multi_reduction <add>, %48, %cst_22 [1] : vector<16x16xf32> to vector<16xf32>
    %50 = vector.shape_cast %49 : vector<16xf32> to vector<16x1xf32>
    %51 = tpu.reciprocal %50 {approx = true} : vector<16x1xf32> -> vector<16x1xf32>
    %52 = vector.broadcast %51 : vector<16x1xf32> to vector<16x16xf32>
    %53 = arith.mulf %48, %52 : vector<16x16xf32>
    %cst_23 = arith.constant dense<0.000000e+00> : vector<16x8xf32>
    %54 = tpu.matmul %53, %40, %cst_23 {dimension_numbers = #tpu.dot_dimension_numbers<[1], [0], [0], [1], [0, 0, 1, 1], [], []>} : vector<16x16xf32>, vector<16x8xf32>, vector<16x8xf32> -> vector<16x8xf32>
    %c8 = arith.constant 8 : index
    %c0_24 = arith.constant 0 : index
    %55 = vector.load %arg5[%c8, %c0_24] : memref<32x32xf32, #tpu.memory_space<vmem>>, vector<8x32xf32>
    %cst_25 = arith.constant dense<0.000000e+00> : vector<16x32xf32>
    %56 = tpu.matmul %54, %55, %cst_25 {dimension_numbers = #tpu.dot_dimension_numbers<[1], [0], [0], [1], [0, 0, 1, 1], [], []>} : vector<16x8xf32>, vector<8x32xf32>, vector<16x32xf32> -> vector<16x32xf32>
    %57 = arith.addf %37, %56 : vector<16x32xf32>
    %58 = vector.extract_strided_slice %16 {offsets = [0, 16], sizes = [16, 8], strides = [1, 1]} : vector<16x32xf32> to vector<16x8xf32>
    %59 = vector.extract_strided_slice %5 {offsets = [0, 48], sizes = [16, 8], strides = [1, 1]} : vector<16x96xf32> to vector<16x8xf32>
    %60 = vector.extract_strided_slice %5 {offsets = [0, 80], sizes = [16, 8], strides = [1, 1]} : vector<16x96xf32> to vector<16x8xf32>
    %61 = tpu.transpose %59, [1, 0] : vector<16x8xf32> -> vector<8x16xf32>
    %cst_26 = arith.constant dense<0.000000e+00> : vector<16x16xf32>
    %62 = tpu.matmul %58, %61, %cst_26 {dimension_numbers = #tpu.dot_dimension_numbers<[1], [0], [0], [1], [0, 0, 1, 1], [], []>} : vector<16x8xf32>, vector<8x16xf32>, vector<16x16xf32> -> vector<16x16xf32>
    %63 = arith.addf %62, %13 : vector<16x16xf32>
    %cst_27 = arith.constant dense<0xFF800000> : vector<16xf32>
    %64 = vector.multi_reduction <maximumf>, %63, %cst_27 [1] : vector<16x16xf32> to vector<16xf32>
    %65 = vector.shape_cast %64 : vector<16xf32> to vector<16x1xf32>
    %66 = vector.broadcast %65 : vector<16x1xf32> to vector<16x16xf32>
    %67 = arith.subf %63, %66 : vector<16x16xf32>
    %68 = math.exp %67 : vector<16x16xf32>
    %cst_28 = arith.constant dense<0.000000e+00> : vector<16xf32>
    %69 = vector.multi_reduction <add>, %68, %cst_28 [1] : vector<16x16xf32> to vector<16xf32>
    %70 = vector.shape_cast %69 : vector<16xf32> to vector<16x1xf32>
    %71 = tpu.reciprocal %70 {approx = true} : vector<16x1xf32> -> vector<16x1xf32>
    %72 = vector.broadcast %71 : vector<16x1xf32> to vector<16x16xf32>
    %73 = arith.mulf %68, %72 : vector<16x16xf32>
    %cst_29 = arith.constant dense<0.000000e+00> : vector<16x8xf32>
    %74 = tpu.matmul %73, %60, %cst_29 {dimension_numbers = #tpu.dot_dimension_numbers<[1], [0], [0], [1], [0, 0, 1, 1], [], []>} : vector<16x16xf32>, vector<16x8xf32>, vector<16x8xf32> -> vector<16x8xf32>
    %c16 = arith.constant 16 : index
    %c0_30 = arith.constant 0 : index
    %75 = vector.load %arg5[%c16, %c0_30] : memref<32x32xf32, #tpu.memory_space<vmem>>, vector<8x32xf32>
    %cst_31 = arith.constant dense<0.000000e+00> : vector<16x32xf32>
    %76 = tpu.matmul %74, %75, %cst_31 {dimension_numbers = #tpu.dot_dimension_numbers<[1], [0], [0], [1], [0, 0, 1, 1], [], []>} : vector<16x8xf32>, vector<8x32xf32>, vector<16x32xf32> -> vector<16x32xf32>
    %77 = arith.addf %57, %76 : vector<16x32xf32>
    %78 = vector.extract_strided_slice %16 {offsets = [0, 24], sizes = [16, 8], strides = [1, 1]} : vector<16x32xf32> to vector<16x8xf32>
    %79 = vector.extract_strided_slice %5 {offsets = [0, 56], sizes = [16, 8], strides = [1, 1]} : vector<16x96xf32> to vector<16x8xf32>
    %80 = vector.extract_strided_slice %5 {offsets = [0, 88], sizes = [16, 8], strides = [1, 1]} : vector<16x96xf32> to vector<16x8xf32>
    %81 = tpu.transpose %79, [1, 0] : vector<16x8xf32> -> vector<8x16xf32>
    %cst_32 = arith.constant dense<0.000000e+00> : vector<16x16xf32>
    %82 = tpu.matmul %78, %81, %cst_32 {dimension_numbers = #tpu.dot_dimension_numbers<[1], [0], [0], [1], [0, 0, 1, 1], [], []>} : vector<16x8xf32>, vector<8x16xf32>, vector<16x16xf32> -> vector<16x16xf32>
    %83 = arith.addf %82, %13 : vector<16x16xf32>
    %cst_33 = arith.constant dense<0xFF800000> : vector<16xf32>
    %84 = vector.multi_reduction <maximumf>, %83, %cst_33 [1] : vector<16x16xf32> to vector<16xf32>
    %85 = vector.shape_cast %84 : vector<16xf32> to vector<16x1xf32>
    %86 = vector.broadcast %85 : vector<16x1xf32> to vector<16x16xf32>
    %87 = arith.subf %83, %86 : vector<16x16xf32>
    %88 = math.exp %87 : vector<16x16xf32>
    %cst_34 = arith.constant dense<0.000000e+00> : vector<16xf32>
    %89 = vector.multi_reduction <add>, %88, %cst_34 [1] : vector<16x16xf32> to vector<16xf32>
    %90 = vector.shape_cast %89 : vector<16xf32> to vector<16x1xf32>
    %91 = tpu.reciprocal %90 {approx = true} : vector<16x1xf32> -> vector<16x1xf32>
    %92 = vector.broadcast %91 : vector<16x1xf32> to vector<16x16xf32>
    %93 = arith.mulf %88, %92 : vector<16x16xf32>
    %cst_35 = arith.constant dense<0.000000e+00> : vector<16x8xf32>
    %94 = tpu.matmul %93, %80, %cst_35 {dimension_numbers = #tpu.dot_dimension_numbers<[1], [0], [0], [1], [0, 0, 1, 1], [], []>} : vector<16x16xf32>, vector<16x8xf32>, vector<16x8xf32> -> vector<16x8xf32>
    %c24 = arith.constant 24 : index
    %c0_36 = arith.constant 0 : index
    %95 = vector.load %arg5[%c24, %c0_36] : memref<32x32xf32, #tpu.memory_space<vmem>>, vector<8x32xf32>
    %cst_37 = arith.constant dense<0.000000e+00> : vector<16x32xf32>
    %96 = tpu.matmul %94, %95, %cst_37 {dimension_numbers = #tpu.dot_dimension_numbers<[1], [0], [0], [1], [0, 0, 1, 1], [], []>} : vector<16x8xf32>, vector<8x32xf32>, vector<16x32xf32> -> vector<16x32xf32>
    %97 = arith.addf %77, %96 : vector<16x32xf32>
    %c0_38 = arith.constant 0 : index
    %c0_39 = arith.constant 0 : index
    %98 = vector.load %arg6[%c0_38, %c0_39] : memref<1x32xf32, #tpu.memory_space<vmem>>, vector<1x32xf32>
    %99 = vector.broadcast %98 : vector<1x32xf32> to vector<16x32xf32>
    %100 = arith.addf %97, %99 : vector<16x32xf32>
    %101 = arith.addf %0, %100 : vector<16x32xf32>
    %c0_40 = arith.constant 0 : index
    %c0_41 = arith.constant 0 : index
    %102 = vector.load %arg11[%c0_40, %c0_41] : memref<1x32xf32, #tpu.memory_space<vmem>>, vector<1x32xf32>
    %c0_42 = arith.constant 0 : index
    %c0_43 = arith.constant 0 : index
    %103 = vector.load %arg12[%c0_42, %c0_43] : memref<1x32xf32, #tpu.memory_space<vmem>>, vector<1x32xf32>
    %cst_44 = arith.constant dense<0.000000e+00> : vector<16xf32>
    %104 = vector.multi_reduction <add>, %101, %cst_44 [1] : vector<16x32xf32> to vector<16xf32>
    %105 = vector.shape_cast %104 : vector<16xf32> to vector<16x1xf32>
    %cst_45 = arith.constant 3.200000e+01 : f32
    %106 = vector.broadcast %cst_45 : f32 to vector<16x1xf32>
    %107 = arith.divf %105, %106 : vector<16x1xf32>
    %108 = vector.broadcast %107 : vector<16x1xf32> to vector<16x32xf32>
    %109 = arith.subf %101, %108 : vector<16x32xf32>
    %110 = arith.mulf %109, %109 : vector<16x32xf32>
    %cst_46 = arith.constant dense<0.000000e+00> : vector<16xf32>
    %111 = vector.multi_reduction <add>, %110, %cst_46 [1] : vector<16x32xf32> to vector<16xf32>
    %112 = vector.shape_cast %111 : vector<16xf32> to vector<16x1xf32>
    %cst_47 = arith.constant 3.200000e+01 : f32
    %113 = vector.broadcast %cst_47 : f32 to vector<16x1xf32>
    %114 = arith.divf %112, %113 : vector<16x1xf32>
    %115 = vector.broadcast %107 : vector<16x1xf32> to vector<16x32xf32>
    %116 = arith.subf %101, %115 : vector<16x32xf32>
    %cst_48 = arith.constant 9.99999974E-6 : f32
    %117 = vector.broadcast %cst_48 : f32 to vector<16x1xf32>
    %118 = arith.addf %114, %117 : vector<16x1xf32>
    %119 = math.rsqrt %118 : vector<16x1xf32>
    %120 = vector.broadcast %119 : vector<16x1xf32> to vector<16x32xf32>
    %121 = arith.mulf %116, %120 : vector<16x32xf32>
    %122 = vector.broadcast %102 : vector<1x32xf32> to vector<16x32xf32>
    %123 = arith.mulf %121, %122 : vector<16x32xf32>
    %124 = vector.broadcast %103 : vector<1x32xf32> to vector<16x32xf32>
    %125 = arith.addf %123, %124 : vector<16x32xf32>
    %c0_49 = arith.constant 0 : index
    %c0_50 = arith.constant 0 : index
    %126 = vector.load %arg7[%c0_49, %c0_50] : memref<32x64xf32, #tpu.memory_space<vmem>>, vector<32x64xf32>
    %cst_51 = arith.constant dense<0.000000e+00> : vector<16x64xf32>
    %127 = tpu.matmul %125, %126, %cst_51 {dimension_numbers = #tpu.dot_dimension_numbers<[1], [0], [0], [1], [0, 0, 1, 1], [], []>} : vector<16x32xf32>, vector<32x64xf32>, vector<16x64xf32> -> vector<16x64xf32>
    %c0_52 = arith.constant 0 : index
    %c0_53 = arith.constant 0 : index
    %128 = vector.load %arg8[%c0_52, %c0_53] : memref<1x64xf32, #tpu.memory_space<vmem>>, vector<1x64xf32>
    %129 = vector.broadcast %128 : vector<1x64xf32> to vector<16x64xf32>
    %130 = arith.addf %127, %129 : vector<16x64xf32>
    %cst_54 = arith.constant 0.000000e+00 : f32
    %131 = vector.broadcast %cst_54 : f32 to vector<16x64xf32>
    %132 = arith.maximumf %130, %131 : vector<16x64xf32>
    %c0_55 = arith.constant 0 : index
    %c0_56 = arith.constant 0 : index
    %133 = vector.load %arg9[%c0_55, %c0_56] : memref<64x32xf32, #tpu.memory_space<vmem>>, vector<64x32xf32>
    %cst_57 = arith.constant dense<0.000000e+00> : vector<16x32xf32>
    %134 = tpu.matmul %132, %133, %cst_57 {dimension_numbers = #tpu.dot_dimension_numbers<[1], [0], [0], [1], [0, 0, 1, 1], [], []>} : vector<16x64xf32>, vector<64x32xf32>, vector<16x32xf32> -> vector<16x32xf32>
    %c0_58 = arith.constant 0 : index
    %c0_59 = arith.constant 0 : index
    %135 = vector.load %arg10[%c0_58, %c0_59] : memref<1x32xf32, #tpu.memory_space<vmem>>, vector<1x32xf32>
    %136 = vector.broadcast %135 : vector<1x32xf32> to vector<16x32xf32>
    %137 = arith.addf %134, %136 : vector<16x32xf32>
    %138 = arith.addf %125, %137 : vector<16x32xf32>
    %c0_60 = arith.constant 0 : index
    %c0_61 = arith.constant 0 : index
    %139 = vector.load %arg13[%c0_60, %c0_61] : memref<1x32xf32, #tpu.memory_space<vmem>>, vector<1x32xf32>
    %c0_62 = arith.constant 0 : index
    %c0_63 = arith.constant 0 : index
    %140 = vector.load %arg14[%c0_62, %c0_63] : memref<1x32xf32, #tpu.memory_space<vmem>>, vector<1x32xf32>
    %cst_64 = arith.constant dense<0.000000e+00> : vector<16xf32>
    %141 = vector.multi_reduction <add>, %138, %cst_64 [1] : vector<16x32xf32> to vector<16xf32>
    %142 = vector.shape_cast %141 : vector<16xf32> to vector<16x1xf32>
    %cst_65 = arith.constant 3.200000e+01 : f32
    %143 = vector.broadcast %cst_65 : f32 to vector<16x1xf32>
    %144 = arith.divf %142, %143 : vector<16x1xf32>
    %145 = vector.broadcast %144 : vector<16x1xf32> to vector<16x32xf32>
    %146 = arith.subf %138, %145 : vector<16x32xf32>
    %147 = arith.mulf %146, %146 : vector<16x32xf32>
    %cst_66 = arith.constant dense<0.000000e+00> : vector<16xf32>
    %148 = vector.multi_reduction <add>, %147, %cst_66 [1] : vector<16x32xf32> to vector<16xf32>
    %149 = vector.shape_cast %148 : vector<16xf32> to vector<16x1xf32>
    %cst_67 = arith.constant 3.200000e+01 : f32
    %150 = vector.broadcast %cst_67 : f32 to vector<16x1xf32>
    %151 = arith.divf %149, %150 : vector<16x1xf32>
    %152 = vector.broadcast %144 : vector<16x1xf32> to vector<16x32xf32>
    %153 = arith.subf %138, %152 : vector<16x32xf32>
    %cst_68 = arith.constant 9.99999974E-6 : f32
    %154 = vector.broadcast %cst_68 : f32 to vector<16x1xf32>
    %155 = arith.addf %151, %154 : vector<16x1xf32>
    %156 = math.rsqrt %155 : vector<16x1xf32>
    %157 = vector.broadcast %156 : vector<16x1xf32> to vector<16x32xf32>
    %158 = arith.mulf %153, %157 : vector<16x32xf32>
    %159 = vector.broadcast %139 : vector<1x32xf32> to vector<16x32xf32>
    %160 = arith.mulf %158, %159 : vector<16x32xf32>
    %161 = vector.broadcast %140 : vector<1x32xf32> to vector<16x32xf32>
    %162 = arith.addf %160, %161 : vector<16x32xf32>
    %c0_69 = arith.constant 0 : index
    %c0_70 = arith.constant 0 : index
    %163 = vector.load %arg15[%c0_69, %c0_70] : memref<16x32xf32, #tpu.memory_space<vmem>>, vector<16x32xf32>
    tpu.vector_store %arg15[%c0_69, %c0_70], %162 {strides = array<i32>} : memref<16x32xf32, #tpu.memory_space<vmem>>, vector<16x32xf32>,
    return
  }
}

</mosaic_0001>

<bundles_post_ra>
// kernel: transformer_encoder.1
= control target key start
LH: loop header
LB: loop body
LE: loop exit
PB: predicated region body
PF: predicated region fallthrough
CT: control target
= control target key end

     0   :  { %vm64_vm0 = vcmask 261120   ;;  %s2371_s0 = inlined_call_operand.vmem [shape: f32[16,32], index: 0, kind: input, shape index: {}]   ;;  %s2372_s1 = inlined_call_operand.vmem [shape: f32[16,1], index: 1, kind: input, shape index: {}]   ;;  %s2373_s2 = inlined_call_operand.vmem [shape: f32[1,16], index: 2, kind: input, shape index: {}]   ;;  %s2374_s3 = inlined_call_operand.vmem [shape: f32[32,96], index: 3, kind: input, shape index: {}]   ;;  %s2375_s4 = inlined_call_operand.vmem [shape: f32[1,96], index: 4, kind: input, shape index: {}]   ;;  %s2376_s5 = inlined_call_operand.vmem [shape: f32[32,32], index: 5, kind: input, shape index: {}]   ;;  %s2377_s6 = inlined_call_operand.vmem [shape: f32[1,32], index: 6, kind: input, shape index: {}]   ;;  %s2378_s7 = inlined_call_operand.vmem [shape: f32[32,64], index: 7, kind: input, shape index: {}]   ;;  %s2379_s8 = inlined_call_operand.vmem [shape: f32[1,64], index: 8, kind: input, shape index: {}]   ;;  %s2380_s9 = inlined_call_operand.vmem [shape: f32[64,32], index: 9, kind: input, shape index: {}]   ;;  %s2381_s10 = inlined_call_operand.vmem [shape: f32[1,32], index: 10, kind: input, shape index: {}]   ;;  %s2382_s11 = inlined_call_operand.vmem [shape: f32[1,32], index: 11, kind: input, shape index: {}]   ;;  %s2383_s12 = inlined_call_operand.vmem [shape: f32[1,32], index: 12, kind: input, shape index: {}]   ;;  %s2384_s13 = inlined_call_operand.vmem [shape: f32[1,32], index: 13, kind: input, shape index: {}]   ;;  %s2385_s14 = inlined_call_operand.vmem [shape: f32[1,32], index: 14, kind: input, shape index: {}]   ;;  %s2386_s15 = inlined_call_operand.hbm [shape: f32[16,32], index: 15, kind: output, shape index: {}]  }
   0x1   :  { %v53_v0 = vld [vmem:[%s2374_s3] sm:$0xff]  ;;  %v54_v1 = vld [vmem:[%s2374_s3 + $0x8] sm:$0xff]  ;;  %v55_v2 = vld [vmem:[%s2374_s3 + $0x10] sm:$0xff] }
   0x2   :  { %v1846_v3 = vpack.c.bf16 %v54_v1, %v53_v0  ;;  %v56_v4 = vld [vmem:[%s2374_s3 + $0x18] sm:$0xff]  ;;  %v2157_v5 = vld [vmem:[%s2371_s0] sm:$0xff] }
   0x3   :  { %v1850_v6 = vpack.c.bf16 %v56_v4, %v55_v2  ;;  %1737 = vmatprep.mubr.msk.f32.mxu1 %vm64_vm0, %v2157_v5 }
   0x4   :  { %20 = vsyncpa [#allocation3], 0  ;;  %1847 = vmatprep.subr.bf16.mxu1 %v1846_v3  ;;  %v2164_v7 = vld [vmem:[%s2371_s0 + $0x8] sm:$0xff]  ;;  %v2046_v8 = vmov 0   ;;  %v1616_v9 = vld [vmem:[%s2375_s4] ss:$0 sm:$0xff] }
   0x5   :  { %1849 = vmatpush3.bf16.msra.mxu1 %v1846_v3  ;;  %1951 = vset.pattern.permute.xlu1 %v2046_v8  ;;  %vm177_vm1 = vcmask 64512   ;;  %s2047_s0 = smov 96   ;;  %s2048_s16 = smov 120   ;;  %v146_v17 = vld [vmem:[%s2372_s1] sm:$0xff]  ;;  %v147_v18 = vld [vmem:[%s2372_s1 + $0x8] sm:$0xff]  ;;  %vm263_vm5 = vcmask 130048  }
   0x6   :  { %1851 = vmatprep.subr.bf16.mxu1 %v1850_v6  ;;  %1950 = vset.pattern.permute.xlu0 %v2046_v8  ;;  %s2049_s4 = smov 88   ;;  %s2050_s21 = smov 112   ;;  %vm2194_vm2 = vmpackc.low %vm177_vm1, %vm177_vm1  ;;  %v1619_v38 = vld [vmem:[%s2373_s2] ss:$0 sm:$0xff]  ;;  %v2052_v39 = vmov -1e+30  }
   0x7   :  { %s2051_s22 = smov 80   ;;  %s2053_s2 = smov 64   ;;  %vm1470_vm6 = vcmask 523264  }
   0x8   :  { %s2054_s24 = smov 72   ;;  %s2055_s25 = smov 104  }
   0x9   :  { %1853 = vmatpush3.bf16.msra.mxu1 %v1850_v6  ;;  %s2056_s26 = smov 56   ;;  %s2057_s27 = smov 48  }
   0xc   :  { %1738 = vmatmul.mubr.msk.f32.vlgmr.msra.gmra.mrb[0].mxu1 %vm64_vm0, %v2164_v7 }
  0xdf   :  { %v1739_v10 = vpop.f32.mrb[0].mxu1 }
  0xe0   :  { %v143_v11 = vadd.f32 %v1739_v10, %v1616_v9  ;;  %v137_v12 = vpop.f32.mrb[1].mxu1 }
  0xe1   :  { %v138_v13 = vadd.f32 %v1616_v9, %v137_v12 }
  0xe2   :  { %v2179_v16 = vmul.f32 0.35355338, %v143_v11 }
  0xe3   :  { %v2171_v14 = vpack.i.bf16 %v143_v11, %v138_v13  ;;  %v2173_v15 = vmul.f32 0.35355338, %v138_v13 }
  0xe5   :  { %1941 = vrot.lane.b32.xlu0 %v2171_v14, %s2047_s0  ;;  %374 = vrot.lane.b32.xlu1 %v2173_v15, %s2048_s16 }
  0xe6   :  { %1744 = vmatprep.mubr.msk.f32.mxu1 %vm177_vm1, %v2173_v15 }
  0xe9   :  { %1946 = vrot.lane.b32.xlu0 %v2171_v14, %s2049_s4  ;;  %376 = vrot.lane.b32.xlu1 %v2179_v16, %s2048_s16  ;;  %s2058_s4 = smov 40  }
  0xed   :  { %151 = vperm.xlu0 %1950, %v146_v17   ;;  %156 = vperm.xlu1 %1951, %v147_v18  }
  0xf1   :  { %737 = vrot.lane.b32.xlu0 %v2173_v15, %s2050_s21  ;;  %1953 = vrot.lane.b32.xlu1 %v2171_v14, %s2051_s22 }
  0xf5   :  { %739 = vrot.lane.b32.xlu1 %v2179_v16, %s2050_s21 }
 0x157   :  { %v1942_v19 = vpop.permute.xlu0 %1941  ;;  %v375_v28 = vpop.permute.xlu1 %374 }
 0x158   :  { %v1944_v20 = vunpack.i.h.bf16 %v1942_v19  ;;  %v1943_v21 = vunpack.i.l.bf16 %v1942_v19 }
 0x15a   :  { %v1854_v23 = vpack.c.bf16 %v1944_v20, %v1943_v21 }
 0x15b   :  { %v1947_v24 = vpop.permute.xlu0 %1946  ;;  %v377_v29 = vpop.permute.xlu1 %376 }
 0x15c   :  { %v1949_v25 = vunpack.i.h.bf16 %v1947_v24  ;;  %v1948_v26 = vunpack.i.l.bf16 %v1947_v24  ;;  %1856 = vmatprep.subr.msk.bf16.mxu1 %vm2194_vm2, %v1854_v23 }
 0x15d   :  { %1859 = vmatpush3.bf16.xpose.msk.msra.mxu1 %vm2194_vm2, %v1854_v23 }
 0x15e   :  { %v1864_v27 = vpack.c.bf16 %v1949_v25, %v1948_v26 }
 0x160   :  { %1866 = vmatprep.subr.msk.bf16.mxu1 %vm2194_vm2, %v1864_v27 }
 0x164   :  { %1745 = vmatmul.mubr.msk.f32.vlgmr.msra.gmra.mrb[2].mxu1 %vm177_vm1, %v2179_v16 }
 0x165   :  { %1869 = vmatpush3.bf16.xpose.msk.msra.mxu1 %vm2194_vm2, %v1864_v27  ;;  %1758 = vmatprep.mubr.msk.f32.mxu1 %vm177_vm1, %v375_v28 }
 0x16c   :  { %v152_v30 = vpop.permute.xlu0 %151  ;;  %v157_v31 = vpop.permute.xlu1 %156  ;;  %1759 = vmatmul.mubr.msk.f32.vlgmr.msra.gmra.mrb[4].mxu1 %vm177_vm1, %v377_v29 }
 0x16d   :  { %vm166_vm3 = vcmp.eq.f32.partialorder %v157_v31, %v1619_v38  ;;  %vm165_vm4 = vcmp.eq.f32.partialorder %v152_v30, %v1619_v38 }
 0x16e   :  { %v2219_v40 = vsel %vm166_vm3, 0.0, %v2052_v39  ;;  %v2221_v41 = vsel %vm165_vm4, 0.0, %v2052_v39 }
 0x170   :  { %v738_v32 = vpop.permute.xlu0 %737  ;;  %v1954_v33 = vpop.permute.xlu1 %1953 }
 0x171   :  { %v1956_v34 = vunpack.i.h.bf16 %v1954_v33  ;;  %v1955_v35 = vunpack.i.l.bf16 %v1954_v33  ;;  %1782 = vmatprep.mubr.msk.f32.mxu1 %vm177_vm1, %v738_v32 }
 0x173   :  { %v1874_v36 = vpack.c.bf16 %v1956_v34, %v1955_v35 }
 0x174   :  { %v740_v37 = vpop.permute.xlu1 %739 }
 0x175   :  { %1876 = vmatprep.subr.msk.bf16.mxu1 %vm2194_vm2, %v1874_v36 }
 0x176   :  { %1879 = vmatpush3.bf16.xpose.msk.msra.mxu1 %vm2194_vm2, %v1874_v36 }
 0x17d   :  { %1783 = vmatmul.mubr.msk.f32.vlgmr.msra.gmra.mrb[6].mxu1 %vm177_vm1, %v740_v37 }
 0x237   :  { %v1746_v42 = vpop.f32.mrb[2].mxu1 }
 0x238   :  { %v260_v43 = vadd.f32 %v1746_v42, %v2219_v40  ;;  %v254_v44 = vpop.f32.mrb[3].mxu1 }
 0x239   :  { %v255_v45 = vadd.f32 %v254_v44, %v2221_v41 }
 0x23a   :  { %v267_v46 = vsel %vm263_vm5, %v260_v43, -inf }
 0x23b   :  { %268 = vmax.xlane.f32.xlu1 %v267_v46  ;;  %v264_v47 = vsel %vm263_vm5, %v255_v45, -inf }
 0x23c   :  { %265 = vmax.xlane.f32.xlu0 %v264_v47 }
 0x23f   :  { %v1760_v48 = vpop.f32.mrb[4].mxu1 }
 0x240   :  { %v456_v49 = vpop.f32.mrb[5].mxu1  ;;  %v462_v51 = vadd.f32 %v1760_v48, %v2219_v40 }
 0x241   :  { %v457_v50 = vadd.f32 %v456_v49, %v2221_v41 }
 0x242   :  { %v468_v53 = vsel %vm263_vm5, %v462_v51, -inf }
 0x243   :  { %v465_v52 = vsel %vm263_vm5, %v457_v50, -inf }
 0x244   :  { %466 = vmax.xlane.f32.xlu0 %v465_v52 }
 0x248   :  { %469 = vmax.xlane.f32.xlu0 %v468_v53 }
 0x250   :  { %v1784_v54 = vpop.f32.mrb[6].mxu1 }
 0x251   :  { %v819_v55 = vpop.f32.mrb[7].mxu1  ;;  %v825_v17 = vadd.f32 %v1784_v54, %v2219_v40 }
 0x252   :  { %v820_v18 = vadd.f32 %v819_v55, %v2221_v41 }
 0x253   :  { %v831_v20 = vsel %vm263_vm5, %v825_v17, -inf }
 0x254   :  { %v828_v19 = vsel %vm263_vm5, %v820_v18, -inf }
 0x2c8   :  { %v269_v56 = vpop.xlane.xlu1 %268 }
 0x2c9   :  { %v271_v57 = vsub.f32 %v260_v43, %v269_v56  ;;  %v266_v58 = vpop.xlane.xlu0 %265 }
 0x2ca   :  { %v270_v59 = vsub.f32 %v255_v45, %v266_v58  ;;  %v373_v58 = vld [vmem:[%s2376_s5] sm:$0xff] }
 0x2cb   :  { %v274_v60 = vmul.f32 1.442695, %v271_v57  ;;  %v574_v57 = vld [vmem:[%s2376_s5 + $0x8] sm:$0xff] }
 0x2cc   :  { %v272_v61 = vmul.f32 1.442695, %v270_v59 }
 0x2cd   :  { %1982 = vpow2.f32 %v274_v60 }
 0x2ce   :  { %1984 = vpow2.f32 %v272_v61 }
 0x2d1   :  { %v467_v62 = vpop.xlane.xlu0 %466 }
 0x2d2   :  { %v471_v63 = vsub.f32 %v457_v50, %v467_v62 }
 0x2d4   :  { %v473_v0 = vmul.f32 1.442695, %v471_v63 }
 0x2d5   :  { %v470_v1 = vpop.xlane.xlu0 %469 }
 0x2d6   :  { %1986 = vpow2.f32 %v473_v0  ;;  %v472_v2 = vsub.f32 %v462_v51, %v470_v1 }
 0x2d7   :  { %v1983_v3 = vpop.eup %1982 }
 0x2d8   :  { %v1985_v4 = vpop.eup %1984  ;;  %v475_v6 = vmul.f32 1.442695, %v472_v2  ;;  %v279_v8 = vsel %vm263_vm5, %v1983_v3, 0.0 }
 0x2d9   :  { %280 = vadd.xlane.f32.xlu0 %v279_v8  ;;  %v276_v9 = vsel %vm263_vm5, %v1985_v4, 0.0 }
 0x2da   :  { %1988 = vpow2.f32 %v475_v6  ;;  %277 = vadd.xlane.f32.xlu1 %v276_v9 }
 0x2e0   :  { %v1987_v10 = vpop.eup %1986 }
 0x2e1   :  { %v477_v11 = vsel %vm263_vm5, %v1987_v10, 0.0 }
 0x2e2   :  { %478 = vadd.xlane.f32.xlu1 %v477_v11 }
 0x2e4   :  { %v1989_v12 = vpop.eup %1988 }
 0x2e5   :  { %v480_v13 = vsel %vm263_vm5, %v1989_v12, 0.0 }
 0x2e6   :  { %481 = vadd.xlane.f32.xlu0 %v480_v13 }
 0x2f3   :  { %1958 = vrot.lane.b32.xlu1 %v2171_v14, %s2053_s2 }
 0x2f7   :  { %1968 = vrot.lane.b32.xlu1 %v2171_v14, %s2054_s24 }
 0x2fb   :  { %1021 = vrot.lane.b32.xlu1 %v2173_v15, %s2055_s25 }
 0x2fc   :  { %1963 = vrot.lane.b32.xlu0 %v2171_v14, %s2056_s26 }
 0x300   :  { %1023 = vrot.lane.b32.xlu0 %v2179_v16, %s2055_s25  ;;  %s2059_s25 = smov [#allocation2]  }
 0x301   :  { %s1605_s26 = sshll.u32 %s2059_s25, 4  ;;  %s1606_s26 = int_to_ptr.vmem [resolvable:$true] %s1605_s26 }
 0x302   :  { %p2027_p1 = scmp.lt.s32.totalorder %s1606_s26, %s1606_s26 }
 0x31f   :  { %829 = vmax.xlane.f32.xlu1 %v828_v19  ;;  %832 = vmax.xlane.f32.xlu0 %v831_v20 }
 0x366   :  { %v281_v23 = vpop.xlane.xlu0 %280 }
 0x367   :  { %v278_v21 = vpop.xlane.xlu1 %277 }
 0x368   :  { %1990 = vrcp.f32 %v278_v21 }
 0x369   :  { %1992 = vrcp.f32 %v281_v23 }
 0x36f   :  { %v479_v15 = vpop.xlane.xlu1 %478 }
 0x370   :  { %1994 = vrcp.f32 %v479_v15 }
 0x372   :  { %v1991_v24 = vpop.eup %1990 }
 0x373   :  { %v1959_v25 = vpop.permute.xlu1 %1958  ;;  %v482_v26 = vpop.xlane.xlu0 %481  ;;  %v284_v16 = vmul.f32 %v1991_v24, %v1985_v4 }
 0x374   :  { %v1961_v27 = vunpack.i.h.bf16 %v1959_v25  ;;  %v1960_v28 = vunpack.i.l.bf16 %v1959_v25  ;;  %1996 = vrcp.f32 %v482_v26  ;;  %v1993_v30 = vpop.eup %1992 }
 0x375   :  { %1751 = vmatprep.mubr.msk.f32.mxu0 %vm263_vm5, %v284_v16  ;;  %v285_v42 = vmul.f32 %v1993_v30, %v1983_v3 }
 0x376   :  { %v1860_v29 = vpack.c.bf16 %v1961_v27, %v1960_v28 }
 0x377   :  { %v1969_v31 = vpop.permute.xlu1 %1968  ;;  %v1964_v32 = vpop.permute.xlu0 %1963 }
 0x378   :  { %v1971_v33 = vunpack.i.h.bf16 %v1969_v31  ;;  %v1970_v34 = vunpack.i.l.bf16 %v1969_v31  ;;  %v1966_v35 = vunpack.i.h.bf16 %v1964_v32  ;;  %v1965_v36 = vunpack.i.l.bf16 %v1964_v32  ;;  %1861 = vmatprep.subr.bf16.mxu0 %v1860_v29 }
 0x379   :  { %1863 = vmatpush3.bf16.msra.mxu0 %v1860_v29 }
 0x37a   :  { %v1995_v37 = vpop.eup %1994  ;;  %v1884_v38 = vpack.c.bf16 %v1971_v33, %v1970_v34  ;;  %v1870_v39 = vpack.c.bf16 %v1966_v35, %v1965_v36  ;;  %v1221_v36 = vld [vmem:[%s2376_s5 + $0x18] sm:$0xff] }
 0x37b   :  { %v1022_v43 = vpop.permute.xlu1 %1021  ;;  %v485_v44 = vmul.f32 %v1995_v37, %v1987_v10  ;;  %v1024_v47 = vpop.permute.xlu0 %1023 }
 0x37c   :  { %1752 = vmatmul.mubr.msk.f32.vlgmr.msra.gmra.mrb[0].mxu0 %vm263_vm5, %v285_v42  ;;  %1871 = vmatprep.subr.bf16.mxu0 %v1870_v39 }
 0x37d   :  { %1886 = vmatprep.subr.msk.bf16.mxu1 %vm2194_vm2, %v1884_v38  ;;  %1801 = vmatprep.mubr.msk.f32.mxu1 %vm177_vm1, %v1022_v43 }
 0x37e   :  { %v1997_v45 = vpop.eup %1996  ;;  %1873 = vmatpush3.bf16.msra.mxu0 %v1870_v39  ;;  %1765 = vmatprep.mubr.msk.f32.mxu0 %vm263_vm5, %v485_v44  ;;  %v1652_v44 = vld [vmem:[%s2377_s6] ss:$0 sm:$0xff] }
 0x37f   :  { %v486_v46 = vmul.f32 %v1997_v45, %v1989_v12  ;;  %1889 = vmatpush3.bf16.xpose.msk.msra.mxu1 %vm2194_vm2, %v1884_v38  ;;  %1768 = vmatprep.subr.mxu0 %v574_v57 }
 0x381   :  { %1766 = vmatmul.mubr.msk.f32.vlgmr.msra.gmra.mrb[2].mxu0 %vm263_vm5, %v486_v46 }
 0x382   :  { %1769 = vmatpush3.msra.mxu0 %v574_v57 }
 0x383   :  { %1773 = vmatprep.subr.mxu0 %v373_v58 }
 0x386   :  { %1802 = vmatmul.mubr.msk.f32.vlgmr.msra.gmra.mrb[8].mxu1 %vm177_vm1, %v1024_v47 }
 0x3ac   :  { %v830_v48 = vpop.xlane.xlu1 %829  ;;  %v833_v49 = vpop.xlane.xlu0 %832 }
 0x3ad   :  { %v834_v50 = vsub.f32 %v820_v18, %v830_v48  ;;  %v835_v51 = vsub.f32 %v825_v17, %v833_v49 }
 0x3af   :  { %v836_v52 = vmul.f32 1.442695, %v834_v50  ;;  %v838_v53 = vmul.f32 1.442695, %v835_v51 }
 0x3b1   :  { %1998 = vpow2.f32 %v836_v52 }
 0x3b2   :  { %2000 = vpow2.f32 %v838_v53 }
 0x3bb   :  { %v1999_v54 = vpop.eup %1998 }
 0x3bc   :  { %v2001_v55 = vpop.eup %2000  ;;  %v840_v56 = vsel %vm263_vm5, %v1999_v54, 0.0 }
 0x3bd   :  { %841 = vadd.xlane.f32.xlu0 %v840_v56  ;;  %v843_v22 = vsel %vm263_vm5, %v2001_v55, 0.0 }
 0x3be   :  { %844 = vadd.xlane.f32.xlu1 %v843_v22 }
 0x3d3   :  { %1973 = vrot.lane.b32.xlu0 %v2171_v14, %s2057_s27  ;;  %s2022_s27 = scalar_lea.vmem %s1606_s26, 256 }
 0x3d4   :  { %p2023_p0 = scmp.ne.s32.totalorder %s1606_s26, %s2022_s27  ;;  %p2028_p2 = scmp.lt.s32.totalorder %s2022_s27, %s2022_s27 }
 0x3d6   :  { %p2029_p3 = por %p2028_p2, %p2027_p1 }
 0x3d8   :  { %p2030_p4 = pnand %p2029_p3, %p2023_p0 }
 0x44a   :  { %v842_v59 = vpop.xlane.xlu0 %841 }
 0x44b   :  { %v845_v63 = vpop.xlane.xlu1 %844  ;;  %2002 = vrcp.f32 %v842_v59 }
 0x44c   :  { %2004 = vrcp.f32 %v845_v63  ;;  %v1363_v63 = vld [vmem:[%s2378_s7 + $0x10] sm:$0xff] }
 0x44e   :  { %v1974_v61 = vpop.permute.xlu0 %1973 }
 0x44f   :  { %v1753_v60 = vpop.f32.mrb[0].mxu0  ;;  %v1976_v0 = vunpack.i.h.bf16 %v1974_v61  ;;  %v1975_v1 = vunpack.i.l.bf16 %v1974_v61  ;;  %v1362_v61 = vld [vmem:[%s2378_s7 + $0x8] sm:$0xff] }
 0x450   :  { %v364_v62 = vpop.f32.mrb[1].mxu0 }
 0x451   :  { %v1880_v4 = vpack.c.bf16 %v1976_v0, %v1975_v1  ;;  %v1364_v0 = vld [vmem:[%s2378_s7 + $0x18] sm:$0xff] }
 0x452   :  { %v1898_v1 = vpack.c.bf16 %v1364_v0, %v1363_v63  ;;  %v1661_v63 = vld [vmem:[%s2384_s13] ss:$0 sm:$0xff] }
 0x454   :  { %v1767_v2 = vpop.f32.mrb[2].mxu0 }
 0x455   :  { %v565_v3 = vpop.f32.mrb[3].mxu0  ;;  %v2003_v9 = vpop.eup %2002 }
 0x456   :  { %1770 = vmatprep.mubr.msk.f32.mxu0 %vm177_vm1, %v565_v3  ;;  %v2005_v13 = vpop.eup %2004  ;;  %v848_v17 = vmul.f32 %v2003_v9, %v1999_v54  ;;  %v1456_v3 = vld [vmem:[%s2380_s9 + $0x8] sm:$0xff] }
 0x457   :  { %1771 = vmatmul.mubr.msk.f32.vlgmr.msra.gmra.mrb[4].mxu0 %vm177_vm1, %v1767_v2  ;;  %v849_v18 = vmul.f32 %v2005_v13, %v2001_v55  ;;  %v1455_v2 = vld [vmem:[%s2380_s9] sm:$0xff] }
 0x458   :  { %1774 = vmatpush3.msra.mxu0 %v373_v58  ;;  %1775 = vmatprep.mubr.msk.f32.mxu0 %vm177_vm1, %v364_v62 }
 0x459   :  { %v1803_v6 = vpop.f32.mrb[8].mxu1  ;;  %1881 = vmatprep.subr.bf16.mxu0 %v1880_v4 }
 0x45a   :  { %v1103_v8 = vpop.f32.mrb[9].mxu1  ;;  %v1109_v11 = vadd.f32 %v1803_v6, %v2219_v40  ;;  %v937_v40 = vld [vmem:[%s2376_s5 + $0x10] sm:$0xff]  ;;  %v1902_v6 = vpack.c.bf16 %v1456_v3, %v1455_v2 }
 0x45b   :  { %v1104_v10 = vadd.f32 %v1103_v8, %v2221_v41  ;;  %v1458_v8 = vld [vmem:[%s2380_s9 + $0x18] sm:$0xff] }
 0x45c   :  { %v1115_v19 = vsel %vm263_vm5, %v1109_v11, -inf }
 0x45d   :  { %v1112_v12 = vsel %vm263_vm5, %v1104_v10, -inf }
 0x45e   :  { %1113 = vmax.xlane.f32.xlu1 %v1112_v12 }
 0x45f   :  { %1776 = vmatmul.mubr.msk.f32.vlgmr.msra.gmra.mrb[4].mxu0 %vm177_vm1, %v1753_v60 }
 0x460   :  { %1883 = vmatpush3.bf16.msra.mxu0 %v1880_v4  ;;  %1789 = vmatprep.mubr.msk.f32.mxu0 %vm263_vm5, %v848_v17  ;;  %v1457_v4 = vld [vmem:[%s2380_s9 + $0x10] sm:$0xff] }
 0x461   :  { %1792 = vmatprep.subr.mxu0 %v937_v40  ;;  %v1906_v9 = vpack.c.bf16 %v1458_v8, %v1457_v4 }
 0x462   :  { %1116 = vmax.xlane.f32.xlu1 %v1115_v19 }
 0x463   :  { %1790 = vmatmul.mubr.msk.f32.vlgmr.msra.gmra.mrb[6].mxu0 %vm263_vm5, %v849_v18 }
 0x464   :  { %1793 = vmatpush3.msra.mxu0 %v937_v40 }
 0x4eb   :  { %v1114_v41 = vpop.xlane.xlu1 %1113 }
 0x4ec   :  { %v1118_v20 = vsub.f32 %v1104_v10, %v1114_v41  ;;  %v1459_v10 = vld [vmem:[%s2380_s9 + $0x20] sm:$0xff] }
 0x4ee   :  { %v1120_v15 = vmul.f32 1.442695, %v1118_v20 }
 0x4ef   :  { %v1117_v21 = vpop.xlane.xlu1 %1116 }
 0x4f0   :  { %v1119_v23 = vsub.f32 %v1109_v11, %v1117_v21  ;;  %v1460_v11 = vld [vmem:[%s2380_s9 + $0x28] sm:$0xff]  ;;  %v1653_v21 = vld [vmem:[%s2382_s11] ss:$0 sm:$0xff] }
 0x4f1   :  { %v1910_v12 = vpack.c.bf16 %v1460_v11, %v1459_v10 }
 0x4f2   :  { %v1122_v24 = vmul.f32 1.442695, %v1119_v23 }
 0x4f4   :  { %2006 = vpow2.f32 %v1122_v24 }
 0x4f5   :  { %2008 = vpow2.f32 %v1120_v15  ;;  %v1654_v15 = vld [vmem:[%s2383_s12] ss:$0 sm:$0xff] }
 0x4fe   :  { %v2007_v25 = vpop.eup %2006 }
 0x4ff   :  { %v1127_v26 = vsel %vm263_vm5, %v2007_v25, 0.0  ;;  %v2009_v16 = vpop.eup %2008 }
 0x500   :  { %1128 = vadd.xlane.f32.xlu1 %v1127_v26  ;;  %v1124_v27 = vsel %vm263_vm5, %v2009_v16, 0.0 }
 0x504   :  { %1125 = vadd.xlane.f32.xlu1 %v1124_v27 }
 0x515   :  { %1978 = vrot.lane.b32.xlu1 %v2171_v14, %s2058_s4 }
 0x536   :  { %v1791_v28 = vpop.f32.mrb[6].mxu0 }
 0x537   :  { %v928_v29 = vpop.f32.mrb[7].mxu0 }
 0x538   :  { %1794 = vmatprep.mubr.msk.f32.mxu0 %vm177_vm1, %v928_v29  ;;  %v1461_v29 = vld [vmem:[%s2380_s9 + $0x30] sm:$0xff] }
 0x539   :  { %1795 = vmatmul.mubr.msk.f32.vlgmr.msra.gmra.mrb[4].mxu0 %vm177_vm1, %v1791_v28 }
 0x58d   :  { %v1129_v30 = vpop.xlane.xlu1 %1128 }
 0x58e   :  { %2010 = vrcp.f32 %v1129_v30  ;;  %v1462_v30 = vld [vmem:[%s2380_s9 + $0x38] sm:$0xff] }
 0x591   :  { %v1126_v31 = vpop.xlane.xlu1 %1125 }
 0x592   :  { %2012 = vrcp.f32 %v1126_v31  ;;  %v1914_v31 = vpack.c.bf16 %v1462_v30, %v1461_v29 }
 0x595   :  { %v1979_v32 = vpop.permute.xlu1 %1978 }
 0x596   :  { %v1981_v33 = vunpack.i.h.bf16 %v1979_v32  ;;  %v1980_v34 = vunpack.i.l.bf16 %v1979_v32  ;;  %v1655_v32 = vld [vmem:[%s2379_s8] ss:$0 sm:$0xff] }
 0x598   :  { %v1890_v35 = vpack.c.bf16 %v1981_v33, %v1980_v34  ;;  %v2011_v14 = vpop.eup %2010 }
 0x599   :  { %v1133_v39 = vmul.f32 %v2011_v14, %v2007_v25 }
 0x59a   :  { %1891 = vmatprep.subr.bf16.mxu0 %v1890_v35 }
 0x59b   :  { %1893 = vmatpush3.bf16.msra.mxu0 %v1890_v35 }
 0x59c   :  { %v2013_v37 = vpop.eup %2012  ;;  %1811 = vmatprep.subr.mxu0 %v1221_v36 }
 0x59d   :  { %v1132_v38 = vmul.f32 %v2013_v37, %v2009_v16 }
 0x59f   :  { %1808 = vmatprep.mubr.msk.f32.mxu0 %vm263_vm5, %v1132_v38  ;;  %v1658_v38 = vld [vmem:[%s2381_s10] ss:$0 sm:$0xff] }
 0x5a0   :  { %1809 = vmatmul.mubr.msk.f32.vlgmr.msra.gmra.mrb[8].mxu0 %vm263_vm5, %v1133_v39 }
 0x5a1   :  { %1812 = vmatpush3.msra.mxu0 %v1221_v36 }
 0x5a2   :  { %1903 = vmatprep.subr.bf16.mxu0 %v1902_v6 }
 0x673   :  { %v1810_v42 = vpop.f32.mrb[8].mxu0 }
 0x674   :  { %v1212_v43 = vpop.f32.mrb[9].mxu0 }
 0x675   :  { %1813 = vmatprep.mubr.msk.f32.mxu0 %vm177_vm1, %v1212_v43 }
 0x676   :  { %1814 = vmatmul.mubr.msk.f32.vlgmr.msra.gmra.mrb[4].mxu0 %vm177_vm1, %v1810_v42 }
 0x677   :  { %1905 = vmatpush3.bf16.msra.mxu0 %v1902_v6 }
 0x678   :  { %1907 = vmatprep.subr.bf16.mxu0 %v1906_v9 }
 0x67b   :  { %1909 = vmatpush3.bf16.msra.mxu0 %v1906_v9 }
 0x67c   :  { %1911 = vmatprep.subr.bf16.mxu0 %v1910_v12 }
 0x67f   :  { %1913 = vmatpush3.bf16.msra.mxu0 %v1910_v12 }
 0x680   :  { %1915 = vmatprep.subr.bf16.mxu0 %v1914_v31 }
 0x683   :  { %1917 = vmatpush3.bf16.msra.mxu0 %v1914_v31 }
 0x749   :  { %v1815_v45 = vpop.f32.mrb[4].mxu0 }
 0x74a   :  { %v1313_v46 = vadd.f32 %v1815_v45, %v1652_v44  ;;  %v1294_v47 = vpop.f32.mrb[5].mxu0 }
 0x74b   :  { %v1312_v48 = vadd.f32 %v1652_v44, %v1294_v47 }
 0x74c   :  { %v1315_v49 = vadd.f32 %v1313_v46, %v2164_v7 }
 0x74d   :  { %v1314_v50 = vadd.f32 %v1312_v48, %v2157_v5  ;;  %v1361_v5 = vld [vmem:[%s2378_s7] sm:$0xff] }
 0x74e   :  { %v1321_v51 = vsel %vm64_vm0, %v1315_v49, 0.0  ;;  %v1894_v62 = vpack.c.bf16 %v1362_v61, %v1361_v5 }
 0x74f   :  { %1322 = vadd.xlane.f32.xlu1 %v1321_v51  ;;  %v1318_v52 = vsel %vm64_vm0, %v1314_v50, 0.0 }
 0x750   :  { %1319 = vadd.xlane.f32.xlu0 %v1318_v52  ;;  %1895 = vmatprep.subr.bf16.mxu1 %v1894_v62 }
 0x751   :  { %1897 = vmatpush3.bf16.msra.mxu1 %v1894_v62 }
 0x752   :  { %1899 = vmatprep.subr.bf16.mxu1 %v1898_v1 }
 0x755   :  { %1901 = vmatpush3.bf16.msra.mxu1 %v1898_v1  ;;  %v1662_v1 = vld [vmem:[%s2385_s14] ss:$0 sm:$0xff] }
 0x7dc   :  { %v1323_v53 = vpop.xlane.xlu1 %1322 }
 0x7dd   :  { %v1326_v54 = vmul.f32 0.03125, %v1323_v53  ;;  %v1320_v55 = vpop.xlane.xlu0 %1319 }
 0x7de   :  { %v1325_v56 = vmul.f32 0.03125, %v1320_v55 }
 0x7df   :  { %v1328_v22 = vsub.f32 %v1315_v49, %v1326_v54 }
 0x7e0   :  { %v1327_v57 = vsub.f32 %v1314_v50, %v1325_v56 }
 0x7e1   :  { %v1330_v60 = vmul.f32 %v1328_v22, %v1328_v22 }
 0x7e2   :  { %v1329_v58 = vmul.f32 %v1327_v57, %v1327_v57 }
 0x7e3   :  { %v1334_v7 = vsel %vm64_vm0, %v1330_v60, 0.0 }
 0x7e4   :  { %v1331_v59 = vsel %vm64_vm0, %v1329_v58, 0.0 }
 0x7e5   :  { %1332 = vadd.xlane.f32.xlu0 %v1331_v59 }
 0x7e9   :  { %1335 = vadd.xlane.f32.xlu0 %v1334_v7 }
 0x872   :  { %v1333_v13 = vpop.xlane.xlu0 %1332 }
 0x873   :  { %v1337_v17 = vmul.f32 0.03125, %v1333_v13 }
 0x875   :  { %v1339_v18 = vadd.f32 1e-05, %v1337_v17 }
 0x876   :  { %v1336_v19 = vpop.xlane.xlu0 %1335 }
 0x877   :  { %2014 = vrsqrt.f32 %v1339_v18  ;;  %v1338_v40 = vmul.f32 0.03125, %v1336_v19 }
 0x879   :  { %v1340_v41 = vadd.f32 1e-05, %v1338_v40 }
 0x87b   :  { %2016 = vrsqrt.f32 %v1340_v41 }
 0x881   :  { %v2015_v20 = vpop.eup %2014 }
 0x882   :  { %v1343_v23 = vmul.f32 %v2015_v20, %v1327_v57 }
 0x884   :  { %v1351_v24 = vmul.f32 %v1653_v21, %v1343_v23 }
 0x885   :  { %v2017_v25 = vpop.eup %2016 }
 0x886   :  { %v1344_v26 = vmul.f32 %v2017_v25, %v1328_v22  ;;  %v1359_v16 = vadd.f32 %v1654_v15, %v1351_v24 }
 0x888   :  { %v1352_v27 = vmul.f32 %v1653_v21, %v1344_v26  ;;  %1824 = vmatprep.mubr.msk.f32.mxu1 %vm64_vm0, %v1359_v16 }
 0x88a   :  { %v1360_v28 = vadd.f32 %v1654_v15, %v1352_v27 }
 0x88c   :  { %1825 = vmatmul.mubr.msk.f32.vlgmr.msra.gmra.mrb[10].mxu1 %vm64_vm0, %v1360_v28 }
 0x95f   :  { %v1826_v33 = vpop.f32.mrb[10].mxu1 }
 0x960   :  { %v1450_v34 = vadd.f32 %v1826_v33, %v1655_v32  ;;  %v1444_v35 = vpop.f32.mrb[11].mxu1 }
 0x961   :  { %v1445_v36 = vadd.f32 %v1655_v32, %v1444_v35 }
 0x962   :  { %v1454_v37 = vmax.f32 %v1450_v34, 0.0 }
 0x963   :  { %v1453_v14 = vmax.f32 %v1445_v36, 0.0 }
 0x965   :  { %1843 = vmatprep.mubr.msk.f32.mxu0 %vm1470_vm6, %v1453_v14 }
 0x966   :  { %1844 = vmatmul.mubr.msk.f32.vlgmr.msra.gmra.mrb[10].mxu0 %vm1470_vm6, %v1454_v37 }
 0xa39   :  { %v1845_v39 = vpop.f32.mrb[10].mxu0 }
 0xa3a   :  { %v1543_v42 = vpop.f32.mrb[11].mxu0  ;;  %v1549_v43 = vadd.f32 %v1845_v39, %v1658_v38 }
 0xa3b   :  { %v1544_v44 = vadd.f32 %v1658_v38, %v1543_v42 }
 0xa3c   :  { %v1553_v47 = vadd.f32 %v1549_v43, %v1360_v28 }
 0xa3d   :  { %v1552_v45 = vadd.f32 %v1544_v44, %v1359_v16 }
 0xa3e   :  { %v1559_v48 = vsel %vm64_vm0, %v1553_v47, 0.0 }
 0xa3f   :  { %v1556_v46 = vsel %vm64_vm0, %v1552_v45, 0.0 }
 0xa40   :  { %1557 = vadd.xlane.f32.xlu0 %v1556_v46 }
 0xa44   :  { %1560 = vadd.xlane.f32.xlu0 %v1559_v48 }
 0xacd   :  { %v1558_v49 = vpop.xlane.xlu0 %1557 }
 0xace   :  { %v1562_v50 = vmul.f32 0.03125, %v1558_v49 }
 0xad0   :  { %v1564_v51 = vsub.f32 %v1552_v45, %v1562_v50 }
 0xad1   :  { %v1561_v52 = vpop.xlane.xlu0 %1560 }
 0xad2   :  { %v1563_v53 = vmul.f32 0.03125, %v1561_v52  ;;  %v1566_v54 = vmul.f32 %v1564_v51, %v1564_v51 }
 0xad4   :  { %v1565_v55 = vsub.f32 %v1553_v47, %v1563_v53  ;;  %v1568_v56 = vsel %vm64_vm0, %v1566_v54, 0.0 }
 0xad5   :  { %1569 = vadd.xlane.f32.xlu0 %v1568_v56 }
 0xad6   :  { %v1567_v22 = vmul.f32 %v1565_v55, %v1565_v55 }
 0xad8   :  { %v1571_v57 = vsel %vm64_vm0, %v1567_v22, 0.0 }
 0xad9   :  { %1572 = vadd.xlane.f32.xlu1 %v1571_v57 }
 0xb62   :  { %v1570_v58 = vpop.xlane.xlu0 %1569 }
 0xb63   :  { %v1574_v59 = vmul.f32 0.03125, %v1570_v58 }
 0xb65   :  { %v1576_v60 = vadd.f32 1e-05, %v1574_v59 }
 0xb66   :  { %v1573_v7 = vpop.xlane.xlu1 %1572 }
 0xb67   :  { %2018 = vrsqrt.f32 %v1576_v60  ;;  %v1575_v5 = vmul.f32 0.03125, %v1573_v7 }
 0xb69   :  { %v1577_v61 = vadd.f32 1e-05, %v1575_v5 }
 0xb6b   :  { %2020 = vrsqrt.f32 %v1577_v61 }
 0xb71   :  { %v2019_v62 = vpop.eup %2018 }
 0xb72   :  { %v1580_v0 = vmul.f32 %v2019_v62, %v1564_v51 }
 0xb74   :  { %v1588_v2 = vmul.f32 %v1661_v63, %v1580_v0 }
 0xb75   :  { %v2021_v3 = vpop.eup %2020 }
 0xb76   :  { %v1581_v4 = vmul.f32 %v2021_v3, %v1565_v55  ;;  %v1596_v6 = vadd.f32 %v1662_v1, %v1588_v2 }
 0xb78   :  { %v1589_v8 = vmul.f32 %v1661_v63, %v1581_v4  ;;  %1598 = vst.msk [vmem:[#allocation2] sm:$0xff] %vm64_vm0, %v1596_v6 }
 0xb7a   :  { %v1597_v9 = vadd.f32 %v1662_v1, %v1589_v8 }
 0xb7c   :  { %1599 = vst.msk [vmem:[#allocation2 + $0x8] sm:$0xff] %vm64_vm0, %v1597_v9 }
 0xb7d   :  { %2033 = shalt.err (!%p2030_p4)
}
 0xb7e   :  { %s2034_s28 = scalar_lea.hbm %s2386_s15, 256 }
 0xb7f   :  { %p2035_p5 = scmp.ne.s32.totalorder %s2386_s15, %s2034_s28  ;;  %p2038_p6 = scmp.lt.u32.totalorder %s2034_s28, %s2386_s15 }
 0xb81   :  { %p2040_p7 = pnand %p2038_p6, %p2035_p5 }
 0xb83   :  { %2043 = shalt.err (!%p2040_p7)
}
 0xb84   :  { %s2060_s7 = smov 128   ;;  %s2061_s16 = smov 8  }
 0xb85   :  { %1611 = dma.vmem_to_hbm [thread:$0]  %s1606_s26, 256, %s2386_s15, [#allocation3], %s2060_s7, %s2060_s7, %s2061_s16  }
 0xb86   :  { %2044 = dma.done.wait [#allocation3], 256  }
 0xb87   :  { %2045 = vsyncadd [#allocation3], 4294967040 }
 0xb88   :  { %1615 = vsyncpa [#allocation3], 1 }

</bundles_post_ra>
